<compile_context>
chip_gen: v5e
topology: v5e:2x2
jax: 0.10.0
libtpu: 0.0.40
codegen_flags: <defaults>
</compile_context>

<pallas_src>
import jax
import jax.numpy as jnp
from jax import lax
from jax.experimental import pallas as pl
from jax.experimental.pallas import tpu as pltpu


def mlp_logsoftmax_kernel(x_ref, w1_ref, b1_ref, w2_ref, b2_ref, w3_ref, b3_ref, oT_ref):
    # x block arrives in natural (TB, in_size) layout as bf16.  The transpose to
    # the lane-dense (features, TB) compute layout is absorbed into the first
    # contraction, so no wrapper HBM transpose pass and no materialized x^T.
    x = x_ref[...]                                                   # (TB, in) bf16

    # layer 1: h1^T = W1 @ x^T + b1      (W1: (25, 10) bf16, b1: (25, 1) f32)
    h1 = lax.dot_general(
        w1_ref[...], x,
        dimension_numbers=(((1,), (1,)), ((), ())),                  # contract on 'in'
        preferred_element_type=jnp.float32) + b1_ref[...]
    h1 = jnp.maximum(h1, 0.0).astype(jnp.bfloat16)                   # (25, TB)

    # layer 2: Linear + ReLU             (W2: (25, 25))
    h2 = jnp.dot(w2_ref[...], h1, preferred_element_type=jnp.float32) + b2_ref[...]
    h2 = jnp.maximum(h2, 0.0).astype(jnp.bfloat16)                   # (25, TB)

    # layer 3: Linear (final ReLU popped)  (W3: (10, 25)) -> logits^T (10, TB)
    logits = jnp.dot(w3_ref[...], h2, preferred_element_type=jnp.float32) + b3_ref[...]

    # log_softmax over the feature axis (axis=0 in transposed layout), f32, stable.
    m = jnp.max(logits, axis=0, keepdims=True)
    shifted = logits - m
    lse = jnp.log(jnp.sum(jnp.exp(shifted), axis=0, keepdims=True))
    oT_ref[...] = shifted - lse                                      # lane-dense store


def _round_up(v, m):
    return ((v + m - 1) // m) * m


def prepare_params(params):
    """One-time weight prep, hoisted out of the per-call forward: bf16 weight
    copies for the MXU, biases as (out, 1) f32 columns for lane-broadcast in
    the transposed compute layout."""
    w1, b1, w2, b2, w3, b3 = params
    return (w1.astype(jnp.bfloat16), b1.reshape(-1, 1).astype(jnp.float32),
            w2.astype(jnp.bfloat16), b2.reshape(-1, 1).astype(jnp.float32),
            w3.astype(jnp.bfloat16), b3.reshape(-1, 1).astype(jnp.float32))


def net_forward(x, kparams, transposed_output=False):
    """Forward pass of Net.

    x: (B, ...) -> flattened to (B, in_size), matching x.view(x.size(0), -1).
    kparams: output of prepare_params().
    Returns log_softmax(logits) as (B, out_size) by default (PyTorch layout),
    or the kernel-native lane-dense (out_size, B) layout if
    transposed_output=True (skips the final transpose / one HBM pass).
    """
    b = x.shape[0]
    # Stream the input as bf16: halves the input HBM bytes; under jit this cast
    # fuses with the producer of x instead of being a separate pass.
    x2d = x.reshape(b, -1).astype(jnp.bfloat16)

    w1b, b1c, w2b, b2c, w3b, b3c = kparams
    in_size = w1b.shape[1]
    out_size = w3b.shape[0]

    # Batch (lane) tile.  Large tiles amortize the ~0.35 us/grid-step overhead;
    # for B > 1024 pick >= 2 tiles (128-aligned) so the "parallel" axis can
    # shard across v7x's two TensorCores.  Double-buffered blocks stay < 4 MiB
    # even at the 32768 cap, well under every generation's scoped VMEM.
    MAX_TB = 32768
    if b <= 1024:
        tb = b                            # single tile; block == full dim is legal
    else:
        tb = min(_round_up(pl.cdiv(b, 2), 128), MAX_TB)
    grid = (pl.cdiv(b, tb),)

    x_spec = pl.BlockSpec((tb, in_size), lambda i: (i, 0))
    o_spec = pl.BlockSpec((out_size, tb), lambda i: (0, i))

    def resident(shape):
        # Constant index_map: DMA'd once, stays VMEM-resident across all batch tiles.
        return pl.BlockSpec(shape, lambda i: (0, 0))

    param_bytes = sum(int(p.size) * p.dtype.itemsize for p in kparams)
    cost = pl.CostEstimate(
        flops=2 * (w1b.size + w2b.size + w3b.size) * b,
        transcendentals=(out_size + 1) * b,             # exp per logit + log per row
        bytes_accessed=b * in_size * 2 + b * out_size * 4 + param_bytes,
    )

    outT = pl.pallas_call(
        mlp_logsoftmax_kernel,
        out_shape=jax.ShapeDtypeStruct((out_size, b), jnp.float32),
        grid=grid,
        in_specs=[
            x_spec,
            resident(w1b.shape), resident(b1c.shape),
            resident(w2b.shape), resident(b2c.shape),
            resident(w3b.shape), resident(b3c.shape),
        ],
        out_specs=o_spec,
        compiler_params=pltpu.CompilerParams(
            dimension_semantics=("parallel",),           # shard batch tiles across TCs (v7x)
            vmem_limit_bytes=32 * 1024 * 1024,           # >> ~4 MiB actually used
        ),
        cost_estimate=cost,
    )(x2d, w1b, b1c, w2b, b2c, w3b, b3c)

    if transposed_output:
        return outT                                      # (out_size, B), lane-dense
    return outT.T                                        # (B, out_size) — PyTorch layout


def init_params(key, in_size=10, out_size=10, n_hidden=2, hidden_size=25):
    """Deterministic PyTorch-style Linear init: U(-1/sqrt(fan_in), 1/sqrt(fan_in)).
    Weights in PyTorch layout (fan_out, fan_in); biases as (fan_out,) vectors."""
    sizes = [in_size] + [hidden_size] * n_hidden + [out_size]
    params = []
    for s_in, s_out in zip(sizes[:-1], sizes[1:]):
        key, kw, kb = jax.random.split(key, 3)
        bound = 1.0 / (s_in ** 0.5)
        w = jax.random.uniform(kw, (s_out, s_in), jnp.float32, -bound, bound)
        bv = jax.random.uniform(kb, (s_out,), jnp.float32, -bound, bound)
        params.extend([w, bv])
    return tuple(params)


if __name__ == "__main__":
    key = jax.random.PRNGKey(0)
    key, kx = jax.random.split(key)

    in_size, out_size = 10, 10
    batch = 8
    x = jax.random.normal(kx, (batch, in_size), jnp.float32)

    params = init_params(key, in_size=in_size, out_size=out_size,
                         n_hidden=2, hidden_size=25)
    kparams = prepare_params(params)            # one-time bf16 weight prep (hoisted)

    fwd = jax.jit(net_forward, static_argnames=("transposed_output",))
    out = fwd(x, kparams)
    jax.block_until_ready(out)

    # Reference check against plain-JAX f32 forward (bf16 matmul tolerance).
    w1, b1, w2, b2, w3, b3 = params
    h1 = jnp.maximum(x @ w1.T + b1, 0.0)
    h2 = jnp.maximum(h1 @ w2.T + b2, 0.0)
    logits = h2 @ w3.T + b3
    ref = logits - jax.scipy.special.logsumexp(logits, axis=1, keepdims=True)

    row_sums = jnp.sum(jnp.exp(out), axis=1)
    assert out.shape == (batch, out_size)
    assert bool(jnp.all(jnp.abs(row_sums - 1.0) < 1e-4))
    assert bool(jnp.max(jnp.abs(out - ref)) < 5e-2)

    print("KERNEL_OK")
</pallas_src>

<mosaic_0001>
module attributes {stable_mosaic.version = 11 : i64} {
  func.func @mlp_logsoftmax_kernel(%arg0: i32, %arg1: memref<8x10xbf16, #tpu.memory_space<vmem>>, %arg2: memref<25x10xbf16, #tpu.memory_space<vmem>>, %arg3: memref<25x1xf32, #tpu.memory_space<vmem>>, %arg4: memref<25x25xbf16, #tpu.memory_space<vmem>>, %arg5: memref<25x1xf32, #tpu.memory_space<vmem>>, %arg6: memref<10x25xbf16, #tpu.memory_space<vmem>>, %arg7: memref<10x1xf32, #tpu.memory_space<vmem>>, %arg8: memref<10x8xf32, #tpu.memory_space<vmem>>) attributes {dimension_semantics = [#tpu.dimension_semantics<parallel>], iteration_bounds = array<i64: 1>, scalar_prefetch = 0 : i64, scratch_operands = 0 : i64, tpu.core_type = #tpu.core_type<tc>, window_params = [{transform_indices = @transform_0, window_bounds = array<i64: 8, 10>}, {pipeline_mode = #tpu.pipeline_mode<synchronous>, transform_indices = @transform_1, window_bounds = array<i64: 25, 10>}, {pipeline_mode = #tpu.pipeline_mode<synchronous>, transform_indices = @transform_2, window_bounds = array<i64: 25, 1>}, {pipeline_mode = #tpu.pipeline_mode<synchronous>, transform_indices = @transform_3, window_bounds = array<i64: 25, 25>}, {pipeline_mode = #tpu.pipeline_mode<synchronous>, transform_indices = @transform_4, window_bounds = array<i64: 25, 1>}, {pipeline_mode = #tpu.pipeline_mode<synchronous>, transform_indices = @transform_5, window_bounds = array<i64: 10, 25>}, {pipeline_mode = #tpu.pipeline_mode<synchronous>, transform_indices = @transform_6, window_bounds = array<i64: 10, 1>}, {transform_indices = @transform_7, window_bounds = array<i64: 10, 8>}]} {
    %c0 = arith.constant 0 : index
    %c0_0 = arith.constant 0 : index
    %0 = vector.load %arg1[%c0, %c0_0] : memref<8x10xbf16, #tpu.memory_space<vmem>>, vector<8x10xbf16>
    %c0_1 = arith.constant 0 : index
    %c0_2 = arith.constant 0 : index
    %1 = vector.load %arg2[%c0_1, %c0_2] : memref<25x10xbf16, #tpu.memory_space<vmem>>, vector<25x10xbf16>
    %cst = arith.constant dense<0.000000e+00> : vector<25x8xf32>
    %2 = tpu.matmul %1, %0, %cst {dimension_numbers = #tpu.dot_dimension_numbers<[1], [1], [0], [0], [0, 0, 1, 0], [], []>} : vector<25x10xbf16>, vector<8x10xbf16>, vector<25x8xf32> -> vector<25x8xf32>
    %c0_3 = arith.constant 0 : index
    %c0_4 = arith.constant 0 : index
    %3 = vector.load %arg3[%c0_3, %c0_4] : memref<25x1xf32, #tpu.memory_space<vmem>>, vector<25x1xf32>
    %4 = vector.broadcast %3 : vector<25x1xf32> to vector<25x8xf32>
    %5 = arith.addf %2, %4 : vector<25x8xf32>
    %cst_5 = arith.constant 0.000000e+00 : f32
    %6 = vector.broadcast %cst_5 : f32 to vector<25x8xf32>
    %7 = arith.maximumf %5, %6 : vector<25x8xf32>
    %8 = arith.truncf %7 : vector<25x8xf32> to vector<25x8xbf16>
    %c0_6 = arith.constant 0 : index
    %c0_7 = arith.constant 0 : index
    %9 = vector.load %arg4[%c0_6, %c0_7] : memref<25x25xbf16, #tpu.memory_space<vmem>>, vector<25x25xbf16>
    %cst_8 = arith.constant dense<0.000000e+00> : vector<25x8xf32>
    %10 = tpu.matmul %9, %8, %cst_8 {dimension_numbers = #tpu.dot_dimension_numbers<[1], [0], [0], [1], [0, 0, 1, 1], [], []>} : vector<25x25xbf16>, vector<25x8xbf16>, vector<25x8xf32> -> vector<25x8xf32>
    %c0_9 = arith.constant 0 : index
    %c0_10 = arith.constant 0 : index
    %11 = vector.load %arg5[%c0_9, %c0_10] : memref<25x1xf32, #tpu.memory_space<vmem>>, vector<25x1xf32>
    %12 = vector.broadcast %11 : vector<25x1xf32> to vector<25x8xf32>
    %13 = arith.addf %10, %12 : vector<25x8xf32>
    %cst_11 = arith.constant 0.000000e+00 : f32
    %14 = vector.broadcast %cst_11 : f32 to vector<25x8xf32>
    %15 = arith.maximumf %13, %14 : vector<25x8xf32>
    %16 = arith.truncf %15 : vector<25x8xf32> to vector<25x8xbf16>
    %c0_12 = arith.constant 0 : index
    %c0_13 = arith.constant 0 : index
    %17 = vector.load %arg6[%c0_12, %c0_13] : memref<10x25xbf16, #tpu.memory_space<vmem>>, vector<10x25xbf16>
    %cst_14 = arith.constant dense<0.000000e+00> : vector<10x8xf32>
    %18 = tpu.matmul %17, %16, %cst_14 {dimension_numbers = #tpu.dot_dimension_numbers<[1], [0], [0], [1], [0, 0, 1, 1], [], []>} : vector<10x25xbf16>, vector<25x8xbf16>, vector<10x8xf32> -> vector<10x8xf32>
    %c0_15 = arith.constant 0 : index
    %c0_16 = arith.constant 0 : index
    %19 = vector.load %arg7[%c0_15, %c0_16] : memref<10x1xf32, #tpu.memory_space<vmem>>, vector<10x1xf32>
    %20 = vector.broadcast %19 : vector<10x1xf32> to vector<10x8xf32>
    %21 = arith.addf %18, %20 : vector<10x8xf32>
    %cst_17 = arith.constant dense<0xFF800000> : vector<8xf32>
    %22 = vector.multi_reduction <maximumf>, %21, %cst_17 [0] : vector<10x8xf32> to vector<8xf32>
    %23 = vector.shape_cast %22 : vector<8xf32> to vector<1x8xf32>
    %24 = vector.broadcast %23 : vector<1x8xf32> to vector<10x8xf32>
    %25 = arith.subf %21, %24 : vector<10x8xf32>
    %26 = math.exp %25 : vector<10x8xf32>
    %cst_18 = arith.constant dense<0.000000e+00> : vector<8xf32>
    %27 = vector.multi_reduction <add>, %26, %cst_18 [0] : vector<10x8xf32> to vector<8xf32>
    %28 = vector.shape_cast %27 : vector<8xf32> to vector<1x8xf32>
    %29 = math.log %28 : vector<1x8xf32>
    %30 = vector.broadcast %29 : vector<1x8xf32> to vector<10x8xf32>
    %31 = arith.subf %25, %30 : vector<10x8xf32>
    %c0_19 = arith.constant 0 : index
    %c0_20 = arith.constant 0 : index
    %32 = vector.load %arg8[%c0_19, %c0_20] : memref<10x8xf32, #tpu.memory_space<vmem>>, vector<10x8xf32>
    tpu.vector_store %arg8[%c0_19, %c0_20], %31 {strides = array<i32>} : memref<10x8xf32, #tpu.memory_space<vmem>>, vector<10x8xf32>,
    return
  }
  func.func @transform_0(%arg0: i32) -> (i32, i32) {
    %c0_i32 = arith.constant 0 : i32
    %c0_i32_0 = arith.constant 0 : i32
    return %arg0, %c0_i32 : i32, i32
  }
  func.func @transform_1(%arg0: i32) -> (i32, i32) {
    %c0_i32 = arith.constant 0 : i32
    %c0_i32_0 = arith.constant 0 : i32
    %c0_i32_1 = arith.constant 0 : i32
    return %c0_i32, %c0_i32_0 : i32, i32
  }
  func.func @transform_2(%arg0: i32) -> (i32, i32) {
    %c0_i32 = arith.constant 0 : i32
    %c0_i32_0 = arith.constant 0 : i32
    %c0_i32_1 = arith.constant 0 : i32
    return %c0_i32, %c0_i32_0 : i32, i32
  }
  func.func @transform_3(%arg0: i32) -> (i32, i32) {
    %c0_i32 = arith.constant 0 : i32
    %c0_i32_0 = arith.constant 0 : i32
    %c0_i32_1 = arith.constant 0 : i32
    return %c0_i32, %c0_i32_0 : i32, i32
  }
  func.func @transform_4(%arg0: i32) -> (i32, i32) {
    %c0_i32 = arith.constant 0 : i32
    %c0_i32_0 = arith.constant 0 : i32
    %c0_i32_1 = arith.constant 0 : i32
    return %c0_i32, %c0_i32_0 : i32, i32
  }
  func.func @transform_5(%arg0: i32) -> (i32, i32) {
    %c0_i32 = arith.constant 0 : i32
    %c0_i32_0 = arith.constant 0 : i32
    %c0_i32_1 = arith.constant 0 : i32
    return %c0_i32, %c0_i32_0 : i32, i32
  }
  func.func @transform_6(%arg0: i32) -> (i32, i32) {
    %c0_i32 = arith.constant 0 : i32
    %c0_i32_0 = arith.constant 0 : i32
    %c0_i32_1 = arith.constant 0 : i32
    return %c0_i32, %c0_i32_0 : i32, i32
  }
  func.func @transform_7(%arg0: i32) -> (i32, i32) {
    %c0_i32 = arith.constant 0 : i32
    %c0_i32_0 = arith.constant 0 : i32
    return %c0_i32, %arg0 : i32, i32
  }
}

</mosaic_0001>

<bundles_post_ra>
// kernel: net_forward.1
= control target key start
LH: loop header
LB: loop body
LE: loop exit
PB: predicated region body
PF: predicated region fallthrough
CT: control target
= control target key end

     0   :  { %vm66_vm0 = vcmask 80896   ;;  %v295_v0 = vmov 0   ;;  %vm146_vm1 = vcmask 1043456   ;;  %vm147_vm2 = vcmask 1044480   ;;  %s412_s2 = inlined_call_operand.vmem [shape: f32[25,1], index: 2, kind: input, shape index: {}]   ;;  %s413_s0 = inlined_call_operand.vmem [shape: bf16[8,10], index: 0, kind: input, shape index: {}]   ;;  %s414_s1 = inlined_call_operand.vmem [shape: bf16[25,10], index: 1, kind: input, shape index: {}]   ;;  %s415_s4 = inlined_call_operand.vmem [shape: f32[25,1], index: 4, kind: input, shape index: {}]   ;;  %s416_s6 = inlined_call_operand.vmem [shape: f32[10,1], index: 6, kind: input, shape index: {}]   ;;  %s417_s3 = inlined_call_operand.vmem [shape: bf16[25,25], index: 3, kind: input, shape index: {}]   ;;  %s418_s5 = inlined_call_operand.vmem [shape: bf16[10,25], index: 5, kind: input, shape index: {}]   ;;  %s419_s7 = inlined_call_operand.vmem [shape: f32[10,8], index: 7, kind: output, shape index: {}]  }
   0x1   :  { %286 = vset.pattern.permute.xlu0 %v295_v0  ;;  %v34_v1 = vld [vmem:[%s412_s2 + $0x10] sm:$0xff]  ;;  %v27_v2 = vld [vmem:[%s413_s0] sm:$0xf]  ;;  %287 = vset.pattern.permute.xlu1 %v295_v0  ;;  %v259_v4 = vld [vmem:[%s414_s1 + $0x8] sm:$0xf]  ;;  %v296_v24 = vmov 65535  }
   0x2   :  { %48 = vperm.xlu0 %286, %v34_v1   ;;  %v74_v3 = vsel %vm66_vm0, %v27_v2, 0  ;;  %288 = vset.pattern.permute.xlu2 %v295_v0  ;;  %v279_v5 = vld [vmem:[%s414_s1 + $0x8] sm:$0x10]  ;;  %v32_v6 = vld [vmem:[%s412_s2] sm:$0xff]  ;;  %v35_v8 = vld [vmem:[%s412_s2 + $0x18] sm:$0x1] }
   0x3   :  { %283 = vmatpush.bf16.xpose.msra.mxu3 %v74_v3  ;;  %83 = vmatpush.bf16.xpose.msra.mxu0 %v74_v3  ;;  %v260_v7 = vor.u32 %v279_v5, %v259_v4  ;;  %v278_v9 = vld [vmem:[%s414_s1] sm:$0xff]  ;;  %v33_v10 = vld [vmem:[%s412_s2 + $0x8] sm:$0xff]  ;;  %v107_v22 = vld [vmem:[%s415_s4 + $0x10] sm:$0xff]  ;;  %v148_v25 = vsel %vm146_vm1, 4294967295, %v296_v24  ;;  %vm139_vm3 = vcmask 203776   ;;  %vm217_vm4 = vcmask 64512  }
   0x4   :  { %38 = vperm.xlu1 %287, %v32_v6   ;;  %v105_v11 = vld [vmem:[%s415_s4] sm:$0xff]  ;;  %v106_v12 = vld [vmem:[%s415_s4 + $0x8] sm:$0xff]  ;;  %121 = vperm.xlu2 %288, %v107_v22   ;;  %v149_v31 = vsel %vm147_vm2, %v148_v25, 0  ;;  %v108_v33 = vld [vmem:[%s415_s4 + $0x18] sm:$0x1]  ;;  %vm219_vm5 = vcmask 58368  }
   0x5   :  { %v181_v13 = vld [vmem:[%s416_s6 + $0x8] sm:$0x3]  ;;  %v280_v38 = vld [vmem:[%s417_s3] sm:$0xff]  ;;  %v281_v41 = vld [vmem:[%s417_s3 + $0x8] sm:$0x10] }
   0x6   :  { %v180_v39 = vld [vmem:[%s416_s6] sm:$0xff]  ;;  %v269_v40 = vld [vmem:[%s417_s3 + $0x8] sm:$0xf] }
   0x7   :  { %v270_v42 = vor.u32 %v281_v41, %v269_v40  ;;  %v275_v61 = vld [vmem:[%s418_s5] sm:$0xf]  ;;  %v282_v62 = vld [vmem:[%s418_s5] sm:$0x10] }
   0x8   :  { %v276_v0 = vor.u32 %v282_v62, %v275_v61 }
   0xa   :  { %262 = vmatmul.msk.bf16.vlgmr.msra.gmra.mxu3 %vm66_vm0, %v260_v7  ;;  %53 = vperm.xlu0 %286, %v35_v8  }
   0xb   :  { %261 = vmatmul.msk.bf16.vlgmr.msra.gmra.mxu0 %vm66_vm0, %v278_v9 }
   0xc   :  { %43 = vperm.xlu1 %287, %v33_v10   ;;  %126 = vperm.xlu2 %288, %v108_v33  }
  0x12   :  { %111 = vperm.xlu0 %286, %v105_v11  }
  0x14   :  { %116 = vperm.xlu1 %287, %v106_v12   ;;  %184 = vperm.xlu2 %288, %v180_v39  }
  0x1a   :  { %189 = vperm.xlu0 %286, %v181_v13  }
  0x5e   :  { %v122_v45 = vpop.permute.xlu2 %121 }
  0x66   :  { %v127_v48 = vpop.permute.xlu2 %126 }
  0x6e   :  { %v185_v2 = vpop.permute.xlu2 %184 }
  0x74   :  { %v49_v14 = vpop.permute.xlu0 %48 }
  0x76   :  { %v39_v16 = vpop.permute.xlu1 %38 }
  0x7c   :  { %v54_v18 = vpop.permute.xlu0 %53 }
  0x7e   :  { %v44_v26 = vpop.permute.xlu1 %43 }
  0x84   :  { %v112_v55 = vpop.permute.xlu0 %111 }
  0x86   :  { %v117_v51 = vpop.permute.xlu1 %116 }
  0x88   :  { %v85_v15 = vpop.f32.mrf.mxu0 }
  0x89   :  { %v86_v27 = vadd.f32 %v85_v15, %v39_v16 }
  0x8b   :  { %v95_v34 = vmax.f32 %v86_v27, 0.0 }
  0x8c   :  { %v190_v4 = vpop.permute.xlu0 %189 }
  0x8d   :  { %v90_v17 = vpop.f32.mrf.mxu3 }
  0x8e   :  { %v91_v19 = vadd.f32 %v90_v17, %v49_v14 }
  0x90   :  { %v87_v20 = vpop.f32.mrf.mxu0  ;;  %v97_v28 = vmax.f32 %v91_v19, 0.0 }
  0x91   :  { %v88_v29 = vadd.f32 %v87_v20, %v44_v26 }
  0x93   :  { %v96_v35 = vmax.f32 %v88_v29, 0.0 }
  0x95   :  { %v92_v21 = vpop.f32.mrf.mxu3  ;;  %v99_v37 = vpack.c.bf16 %v96_v35, %v95_v34 }
  0x96   :  { %v93_v23 = vadd.f32 %v92_v21, %v54_v18 }
  0x98   :  { %v98_v30 = vmax.f32 %v93_v23, 0.0 }
  0x9a   :  { %v100_v32 = vpack.c.bf16 %v98_v30, %v97_v28 }
  0x9c   :  { %v151_v36 = vand.u32 %v149_v31, %v100_v32 }
  0x9e   :  { %159 = vmatpush.bf16.msra.mxu1 %v151_v36 }
  0xa2   :  { %160 = vmatpush.bf16.msra.mxu1 %v99_v37 }
  0xa5   :  { %271 = vmatmul.msk.bf16.vlgmr.msra.gmra.mxu1 %vm139_vm3, %v280_v38 }
  0xb5   :  { %272 = vmatmul.msk.bf16.gmra.mxu1 %vm139_vm3, %v270_v42 }
 0x122   :  { %v162_v43 = vpop.f32.mrf.mxu1 }
 0x123   :  { %v163_v56 = vadd.f32 %v162_v43, %v112_v55 }
 0x125   :  { %v172_v60 = vmax.f32 %v163_v56, 0.0 }
 0x12a   :  { %v164_v44 = vpop.f32.mrf.mxu1 }
 0x12b   :  { %v165_v52 = vadd.f32 %v164_v44, %v117_v51 }
 0x12d   :  { %v173_v58 = vmax.f32 %v165_v52, 0.0 }
 0x12f   :  { %v176_v63 = vpack.c.bf16 %v173_v58, %v172_v60 }
 0x132   :  { %v167_v46 = vpop.f32.mrf.mxu1 }
 0x133   :  { %v168_v47 = vadd.f32 %v167_v46, %v122_v45 }
 0x135   :  { %v174_v53 = vmax.f32 %v168_v47, 0.0 }
 0x13a   :  { %v169_v49 = vpop.f32.mrf.mxu1 }
 0x13b   :  { %v170_v50 = vadd.f32 %v169_v49, %v127_v48 }
 0x13d   :  { %v175_v54 = vmax.f32 %v170_v50, 0.0 }
 0x13f   :  { %v177_v57 = vpack.c.bf16 %v175_v54, %v174_v53 }
 0x141   :  { %v201_v59 = vand.u32 %v177_v57, %v149_v31 }
 0x143   :  { %209 = vmatpush.bf16.msra.mxu2 %v201_v59 }
 0x147   :  { %210 = vmatpush.bf16.msra.mxu2 %v176_v63 }
 0x14a   :  { %277 = vmatmul.msk.bf16.vlgmr.msra.gmra.mxu2 %vm139_vm3, %v276_v0 }
 0x1cd   :  { %v212_v1 = vpop.f32.mrf.mxu2 }
 0x1ce   :  { %v213_v3 = vadd.f32 %v212_v1, %v185_v2 }
 0x1d0   :  { %v218_v7 = vsel %vm217_vm4, %v213_v3, -inf }
 0x1d5   :  { %v214_v5 = vpop.f32.mrf.mxu2 }
 0x1d6   :  { %v215_v6 = vadd.f32 %v214_v5, %v190_v4 }
 0x1d8   :  { %v220_v8 = vsel %vm219_vm5, %v215_v6, -inf }
 0x1d9   :  { %v221_v9 = vmax.f32 %v218_v7, %v220_v8 }
 0x1db   :  { %v222_v10 = vrot.slane %v221_v9, 4 }
 0x1dd   :  { %v223_v11 = vmax.f32 %v221_v9, %v222_v10 }
 0x1df   :  { %v224_v12 = vrot.slane %v223_v11, 2 }
 0x1e1   :  { %v225_v13 = vmax.f32 %v223_v11, %v224_v12 }
 0x1e3   :  { %v226_v14 = vrot.slane %v225_v13, 1 }
 0x1e5   :  { %v227_v15 = vmax.f32 %v225_v13, %v226_v14 }
 0x1e7   :  { %v228_v16 = vsub.f32 %v213_v3, %v227_v15  ;;  %v229_v17 = vsub.f32 %v215_v6, %v227_v15 }
 0x1e9   :  { %v230_v18 = vmul.f32 1.442695, %v228_v16  ;;  %v232_v19 = vmul.f32 1.442695, %v229_v17 }
 0x1eb   :  { %289 = vpow2.f32 %v230_v18 }
 0x1ec   :  { %291 = vpow2.f32 %v232_v19 }
 0x1f1   :  { %v290_v20 = vpop.eup %289 }
 0x1f2   :  { %v292_v21 = vpop.eup %291  ;;  %v234_v22 = vsel %vm217_vm4, %v290_v20, 0.0 }
 0x1f3   :  { %v235_v23 = vsel %vm219_vm5, %v292_v21, 0.0 }
 0x1f4   :  { %v236_v24 = vadd.f32 %v235_v23, %v234_v22 }
 0x1f6   :  { %v237_v25 = vrot.slane %v236_v24, 4 }
 0x1f8   :  { %v238_v26 = vadd.f32 %v237_v25, %v236_v24 }
 0x1fa   :  { %v239_v27 = vrot.slane %v238_v26, 2 }
 0x1fc   :  { %v240_v28 = vadd.f32 %v239_v27, %v238_v26 }
 0x1fe   :  { %v241_v29 = vrot.slane %v240_v28, 1 }
 0x200   :  { %v242_v30 = vadd.f32 %v241_v29, %v240_v28 }
 0x202   :  { %293 = vlog2.f32 %v242_v30 }
 0x208   :  { %v294_v31 = vpop.eup %293 }
 0x209   :  { %v244_v32 = vmul.f32 0.6931472, %v294_v31 }
 0x20b   :  { %v245_v33 = vsub.f32 %v228_v16, %v244_v32  ;;  %v246_v34 = vsub.f32 %v229_v17, %v244_v32 }
 0x20d   :  { %247 = vst.msk [vmem:[%s419_s7] sm:$0xff] %vm217_vm4, %v245_v33 }
 0x20e   :  { %248 = vst.msk [vmem:[%s419_s7 + $0x8] sm:$0x3] %vm219_vm5, %v246_v34 }

</bundles_post_ra>
